<compile_context>
chip_gen: v5e
topology: v5e:2x2
jax: 0.10.0
libtpu: 0.0.40
codegen_flags: <defaults>
</compile_context>

<pallas_src>
import jax
import jax.numpy as jnp
from jax.experimental import pallas as pl
from jax.experimental.pallas import tpu as pltpu

HIDDEN = 64
OUT = 2


def _round_up(x, m):
    return ((x + m - 1) // m) * m


def pinn_kernel(t_ref, w_f_ref, b_f_ref, w_out_ref, b_out_ref, o_ref):
    # t_ref: (TB, 1); w_f/b_f: (1, H); w_out: (H, OUT); b_out: (1, OUT)
    x = jnp.sin(t_ref[...])                                   # (TB, 1)

    # Fused Linear(1,H) -> Linear(H,H): pure VPU broadcast FMA (no MXU).
    h = x * w_f_ref[...] + b_f_ref[...]                       # (TB, H)
    h = jnp.maximum(h, 0.0)                                   # ReLU (+ eval-mode dropout = identity)

    # out_layer: Linear(H -> OUT); tiny N=2 matmul on the MXU.
    o_ref[...] = (jnp.dot(h, w_out_ref[...],
                          preferred_element_type=jnp.float32)
                  + b_out_ref[...])                           # (TB, OUT)


def pinn_forward(t, params, tile_b=2048):
    """t: (B, 1) f32. params: unfused PyTorch-layout params (W stored (in,out))."""
    w_in, b_in, w1, b1, w_out, b_out = params

    # Algebraic fold of the first two linears (exact up to fp reassociation).
    w_f = w_in @ w1                  # (1, H)
    b_f = b_in @ w1 + b1             # (1, H)

    B = t.shape[0]
    TB = min(tile_b, _round_up(B, 8))     # tile multiple of 8 sublanes
    Bp = _round_up(B, TB)
    if Bp != B:
        t = jnp.pad(t, ((0, Bp - B), (0, 0)))

    out = pl.pallas_call(
        pinn_kernel,
        out_shape=jax.ShapeDtypeStruct((Bp, OUT), jnp.float32),
        grid=(Bp // TB,),
        in_specs=[
            pl.BlockSpec((TB, 1), lambda i: (i, 0)),          # t tile (pipelined)
            pl.BlockSpec(w_f.shape, lambda i: (0, 0)),        # weights: VMEM-resident
            pl.BlockSpec(b_f.shape, lambda i: (0, 0)),
            pl.BlockSpec(w_out.shape, lambda i: (0, 0)),
            pl.BlockSpec(b_out.shape, lambda i: (0, 0)),
        ],
        out_specs=pl.BlockSpec((TB, OUT), lambda i: (i, 0)),
        compiler_params=pltpu.CompilerParams(
            dimension_semantics=("parallel",)),
    )(t, w_f, b_f, w_out, b_out)

    return out[:B]


def init_params(key, hidden=HIDDEN, out=OUT):
    """Deterministic init. Weights stored as (in, out) = PyTorch weight.T."""
    ks = jax.random.split(key, 6)

    # PyTorch Linear default init: U(-1/sqrt(fan_in), 1/sqrt(fan_in))
    def uni(k, shape, fan_in):
        bound = 1.0 / jnp.sqrt(fan_in)
        return jax.random.uniform(k, shape, jnp.float32, -bound, bound)

    w_in = uni(ks[0], (1, hidden), 1.0)
    b_in = uni(ks[1], (1, hidden), 1.0)
    w1 = uni(ks[2], (hidden, hidden), float(hidden))
    b1 = uni(ks[3], (1, hidden), float(hidden))
    w_out = uni(ks[4], (hidden, out), float(hidden))
    b_out = uni(ks[5], (1, out), float(hidden))
    return (w_in, b_in, w1, b1, w_out, b_out)


def pinn_reference(t, params):
    """Pure-JAX reference (unfused) for correctness checking."""
    w_in, b_in, w1, b1, w_out, b_out = params
    x = jnp.sin(t)
    h = x @ w_in + b_in
    h = jnp.maximum(h @ w1 + b1, 0.0)
    return h @ w_out + b_out


if __name__ == "__main__":
    key = jax.random.PRNGKey(0)
    k_t, k_t2, k_p = jax.random.split(key, 3)
    params = init_params(k_p)

    # 1) Small ragged batch with a tiny tile so the test exercises the grid,
    #    weight residency, and the padding/tail path (B=20, TB=8 -> grid=(3,)).
    B1 = 20
    t1 = jax.random.normal(k_t, (B1, 1), jnp.float32)
    out1 = jax.block_until_ready(pinn_forward(t1, params, tile_b=8))
    ref1 = pinn_reference(t1, params)
    assert out1.shape == (B1, OUT)
    assert jnp.allclose(out1, ref1, atol=1e-5, rtol=1e-5), (
        f"mismatch (small): max err {jnp.max(jnp.abs(out1 - ref1))}")

    # 2) Larger ragged batch with the default (large) tile: single-tile
    #    padding path, default config used in practice.
    B2 = 1000
    t2 = jax.random.normal(k_t2, (B2, 1), jnp.float32)
    out2 = jax.block_until_ready(pinn_forward(t2, params))
    ref2 = pinn_reference(t2, params)
    assert out2.shape == (B2, OUT)
    assert jnp.allclose(out2, ref2, atol=1e-5, rtol=1e-5), (
        f"mismatch (large): max err {jnp.max(jnp.abs(out2 - ref2))}")

    print("KERNEL_OK")
</pallas_src>

<mosaic_0001>
module attributes {stable_mosaic.version = 11 : i64} {
  func.func @pinn_kernel(%arg0: i32, %arg1: memref<8x1xf32, #tpu.memory_space<vmem>>, %arg2: memref<1x64xf32, #tpu.memory_space<vmem>>, %arg3: memref<1x64xf32, #tpu.memory_space<vmem>>, %arg4: memref<64x2xf32, #tpu.memory_space<vmem>>, %arg5: memref<1x2xf32, #tpu.memory_space<vmem>>, %arg6: memref<8x2xf32, #tpu.memory_space<vmem>>) attributes {dimension_semantics = [#tpu.dimension_semantics<parallel>], iteration_bounds = array<i64: 3>, scalar_prefetch = 0 : i64, scratch_operands = 0 : i64, tpu.core_type = #tpu.core_type<tc>, window_params = [{transform_indices = @transform_0, window_bounds = array<i64: 8, 1>}, {pipeline_mode = #tpu.pipeline_mode<synchronous>, transform_indices = @transform_1, window_bounds = array<i64: 1, 64>}, {pipeline_mode = #tpu.pipeline_mode<synchronous>, transform_indices = @transform_2, window_bounds = array<i64: 1, 64>}, {pipeline_mode = #tpu.pipeline_mode<synchronous>, transform_indices = @transform_3, window_bounds = array<i64: 64, 2>}, {pipeline_mode = #tpu.pipeline_mode<synchronous>, transform_indices = @transform_4, window_bounds = array<i64: 1, 2>}, {transform_indices = @transform_5, window_bounds = array<i64: 8, 2>}]} {
    %c0 = arith.constant 0 : index
    %c0_0 = arith.constant 0 : index
    %0 = vector.load %arg1[%c0, %c0_0] : memref<8x1xf32, #tpu.memory_space<vmem>>, vector<8x1xf32>
    %1 = math.sin %0 : vector<8x1xf32>
    %c0_1 = arith.constant 0 : index
    %c0_2 = arith.constant 0 : index
    %2 = vector.load %arg2[%c0_1, %c0_2] : memref<1x64xf32, #tpu.memory_space<vmem>>, vector<1x64xf32>
    %3 = vector.broadcast %1 : vector<8x1xf32> to vector<8x64xf32>
    %4 = vector.broadcast %2 : vector<1x64xf32> to vector<8x64xf32>
    %5 = arith.mulf %3, %4 : vector<8x64xf32>
    %c0_3 = arith.constant 0 : index
    %c0_4 = arith.constant 0 : index
    %6 = vector.load %arg3[%c0_3, %c0_4] : memref<1x64xf32, #tpu.memory_space<vmem>>, vector<1x64xf32>
    %7 = vector.broadcast %6 : vector<1x64xf32> to vector<8x64xf32>
    %8 = arith.addf %5, %7 : vector<8x64xf32>
    %cst = arith.constant 0.000000e+00 : f32
    %9 = vector.broadcast %cst : f32 to vector<8x64xf32>
    %10 = arith.maximumf %8, %9 : vector<8x64xf32>
    %c0_5 = arith.constant 0 : index
    %c0_6 = arith.constant 0 : index
    %11 = vector.load %arg4[%c0_5, %c0_6] : memref<64x2xf32, #tpu.memory_space<vmem>>, vector<64x2xf32>
    %cst_7 = arith.constant dense<0.000000e+00> : vector<8x2xf32>
    %12 = tpu.matmul %10, %11, %cst_7 {dimension_numbers = #tpu.dot_dimension_numbers<[1], [0], [0], [1], [0, 0, 1, 1], [], []>} : vector<8x64xf32>, vector<64x2xf32>, vector<8x2xf32> -> vector<8x2xf32>
    %c0_8 = arith.constant 0 : index
    %c0_9 = arith.constant 0 : index
    %13 = vector.load %arg5[%c0_8, %c0_9] : memref<1x2xf32, #tpu.memory_space<vmem>>, vector<1x2xf32>
    %14 = vector.broadcast %13 : vector<1x2xf32> to vector<8x2xf32>
    %15 = arith.addf %12, %14 : vector<8x2xf32>
    %c0_10 = arith.constant 0 : index
    %c0_11 = arith.constant 0 : index
    %16 = vector.load %arg6[%c0_10, %c0_11] : memref<8x2xf32, #tpu.memory_space<vmem>>, vector<8x2xf32>
    tpu.vector_store %arg6[%c0_10, %c0_11], %15 {strides = array<i32>} : memref<8x2xf32, #tpu.memory_space<vmem>>, vector<8x2xf32>,
    return
  }
  func.func @transform_0(%arg0: i32) -> (i32, i32) {
    %c0_i32 = arith.constant 0 : i32
    %c0_i32_0 = arith.constant 0 : i32
    return %arg0, %c0_i32 : i32, i32
  }
  func.func @transform_1(%arg0: i32) -> (i32, i32) {
    %c0_i32 = arith.constant 0 : i32
    %c0_i32_0 = arith.constant 0 : i32
    %c0_i32_1 = arith.constant 0 : i32
    return %c0_i32, %c0_i32_0 : i32, i32
  }
  func.func @transform_2(%arg0: i32) -> (i32, i32) {
    %c0_i32 = arith.constant 0 : i32
    %c0_i32_0 = arith.constant 0 : i32
    %c0_i32_1 = arith.constant 0 : i32
    return %c0_i32, %c0_i32_0 : i32, i32
  }
  func.func @transform_3(%arg0: i32) -> (i32, i32) {
    %c0_i32 = arith.constant 0 : i32
    %c0_i32_0 = arith.constant 0 : i32
    %c0_i32_1 = arith.constant 0 : i32
    return %c0_i32, %c0_i32_0 : i32, i32
  }
  func.func @transform_4(%arg0: i32) -> (i32, i32) {
    %c0_i32 = arith.constant 0 : i32
    %c0_i32_0 = arith.constant 0 : i32
    %c0_i32_1 = arith.constant 0 : i32
    return %c0_i32, %c0_i32_0 : i32, i32
  }
  func.func @transform_5(%arg0: i32) -> (i32, i32) {
    %c0_i32 = arith.constant 0 : i32
    %c0_i32_0 = arith.constant 0 : i32
    return %arg0, %c0_i32 : i32, i32
  }
}

</mosaic_0001>

<bundles_post_ra>
// kernel: tpu_custom_call.1
= control target key start
LH: loop header
LB: loop body
LE: loop exit
PB: predicated region body
PF: predicated region fallthrough
CT: control target
= control target key end

     0   :  { %s560_s18 = smov 0   ;;  %s668_s0 = inlined_call_operand.vmem [shape: f32[24,1], index: 0, kind: input, shape index: {}]   ;;  %s669_s1 = inlined_call_operand.vmem [shape: f32[1,64], index: 1, kind: input, shape index: {}]   ;;  %s670_s2 = inlined_call_operand.vmem [shape: f32[1,64], index: 2, kind: input, shape index: {}]   ;;  %s671_s3 = inlined_call_operand.vmem [shape: f32[64,2], index: 3, kind: input, shape index: {}]   ;;  %s672_s4 = inlined_call_operand.vmem [shape: f32[1,2], index: 4, kind: input, shape index: {}]   ;;  %s673_s5 = inlined_call_operand.vmem [shape: f32[24,2], index: 5, kind: output, shape index: {}]  }
   0x1 LB: > { %s483_s19 = sadd.s32 4294967295, %s521_s18   ;;  %p487_p0 = scmp.ge.s32.totalorder %s521_s18, 1  ;;  %s521_s18 = sphi %s560_s18, %s15_s18  }
   0x2   : > { %p186_p1 = scmp.lt.s32.totalorder %s521_s18, 4 }
   0x4   : > { %p187_p2 = pnand %p487_p0, %p186_p1 }
   0x5   : > { %p212_p3 = scmp.lt.s32.totalorder (!%p187_p2), %s483_s19, 2 }
   0x6   : > { %190 = sbr.rel (%p187_p2) target bundleno = 361 (0x169), region = 40 }
   0xb   : > { %v523_v0 = vmov 0   ;;  %s675_s19 = smov (!%p212_p3, %s483_s19), 2  ;;  %v524_v13 = vmov 683565275   ;;  %v525_v15 = vmov 2475754826  }
   0xc   : > { %511 = vset.pattern.permute.xlu0 %v523_v0  ;;  %s488_s20 = sshll.u32 %s675_s19, 3  ;;  %v526_v17 = vmov 2131351028   ;;  %v527_v19 = vmov 2102212464  }
   0xd   : > { %s215_s23 = scalar_lea.vmem %s668_s0, %s488_s20  ;;  %v528_v21 = vmov 920167782   ;;  %v529_v27 = vmov 1326507024   ;;  %s219_s26 = scalar_lea.vmem %s673_s5, %s488_s20 }
   0xe   : > { %v577_v1 = vld [vmem:[%s215_s23] sm:$0xff] }
   0xf   : > { %v224_v2 = vand.u32 2139095040, %v577_v1  ;;  %v221_v4 = vand.u32 2147483647, %v577_v1  ;;  %vm223_vm12 = vcmp.lt.s32.totalorder %v577_v1, 0 }
  0x11   : > { %v225_v3 = vshrl.u32 %v224_v2, 23  ;;  %v228_v7 = vand.u32 8388607, %v221_v4  ;;  %vm222_vm13 = vcmp.le.f32.partialorder %v221_v4, 0.7853982 }
  0x13   : > { %v490_v5 = vadd.s32 4294967169, %v225_v3  ;;  %v229_v10 = vor.u32 8388608, %v228_v7 }
  0x15   : > { %v231_v6 = vadd.s32 1, %v490_v5  ;;  %v586_v29 = vshll.u32 %v229_v10, 8 }
  0x17   : > { %vm232_vm0 = vcmp.gt.s32.totalorder %v231_v6, 0  ;;  %v270_v41 = vand.u32 65535, %v586_v29  ;;  %v271_v42 = vshrl.u32 %v586_v29, 16 }
  0x18   : > { %v233_v8 = vsel %vm232_vm0, %v231_v6, 0 }
  0x19   : > { %v235_v9 = vand.u32 31, %v233_v8  ;;  %v583_v11 = vshrl.u32 %v233_v8, 5 }
  0x1b   : > { %v236_v12 = vsub.s32 32, %v235_v9  ;;  %v238_v14 = vshll.u32 %v524_v13, %v235_v9  ;;  %v241_v16 = vshll.u32 %v525_v15, %v235_v9  ;;  %v244_v18 = vshll.u32 %v526_v17, %v235_v9 }
  0x1c   : > { %v247_v20 = vshll.u32 %v527_v19, %v235_v9  ;;  %v250_v22 = vshll.u32 %v528_v21, %v235_v9  ;;  %vm253_vm1 = vcmp.lt.s32.totalorder %v583_v11, 1  ;;  %vm256_vm2 = vcmp.lt.s32.totalorder %v583_v11, 4 }
  0x1d   : > { %v239_v23 = vshrl.u32 %v525_v15, %v236_v12  ;;  %v242_v24 = vshrl.u32 %v526_v17, %v236_v12  ;;  %v245_v25 = vshrl.u32 %v527_v19, %v236_v12  ;;  %v248_v26 = vshrl.u32 %v528_v21, %v236_v12 }
  0x1e   : > { %v251_v28 = vshrl.u32 %v529_v27, %v236_v12  ;;  %vm255_vm3 = vcmp.lt.s32.totalorder %v583_v11, 3  ;;  %vm254_vm4 = vcmp.lt.s32.totalorder %v583_v11, 2  ;;  %v237_v49 = vshrl.u32 %v524_v13, %v236_v12 }
  0x1f   : > { %v240_v30 = vor.u32 %v239_v23, %v238_v14  ;;  %v243_v31 = vor.u32 %v242_v24, %v241_v16  ;;  %v246_v32 = vor.u32 %v245_v25, %v244_v18  ;;  %v249_v33 = vor.u32 %v248_v26, %v247_v20 }
  0x20   : > { %v252_v34 = vor.u32 %v251_v28, %v250_v22 }
  0x21   : > { %v261_v35 = vsel %vm253_vm1, %v240_v30, %v243_v31  ;;  %v265_v36 = vsel %vm253_vm1, %v243_v31, %v246_v32  ;;  %v262_v37 = vsel %vm256_vm2, %v249_v33, 920167782  ;;  %v257_v62 = vsel %vm253_vm1, %v237_v49, %v240_v30 }
  0x22   : > { %v266_v38 = vsel %vm256_vm2, %v252_v34, 1326507024  ;;  %v263_v39 = vsel %vm255_vm3, %v246_v32, %v262_v37  ;;  %v258_v2 = vsel %vm256_vm2, %v246_v32, 2102212464  ;;  %vm364_vm1 = vweird.f32 %v577_v1 }
  0x23   : > { %v267_v40 = vsel %vm255_vm3, %v249_v33, %v266_v38  ;;  %v264_v43 = vsel %vm254_vm4, %v261_v35, %v263_v39  ;;  %v259_v13 = vsel %vm255_vm3, %v243_v31, %v258_v2  ;;  %vm404_vm2 = vcmask 523264  }
  0x24   : > { %v268_v44 = vsel %vm254_vm4, %v265_v36, %v267_v40  ;;  %v294_v47 = vand.u32 65535, %v264_v43  ;;  %v295_v48 = vshrl.u32 %v264_v43, 16  ;;  %v260_v21 = vsel %vm254_vm4, %v257_v62, %v259_v13 }
  0x25   : > { %v272_v45 = vand.u32 65535, %v268_v44  ;;  %v273_v46 = vshrl.u32 %v268_v44, 16  ;;  %v314_v25 = vmul.u32 %v586_v29, %v260_v21  ;;  %v399_v44 = vld [vmem:[%s671_s3 + $0x38] sm:$0xff]  ;;  %v393_v21 = vld [vmem:[%s671_s3 + $0x8] sm:$0xff]  ;;  %vm428_vm3 = vcmask 15360  }
  0x26   : > { %v296_v53 = vmul.u32 %v294_v47, %v270_v41  ;;  %v297_v54 = vmul.u32 %v295_v48, %v270_v41  ;;  %v298_v55 = vmul.u32 %v294_v47, %v271_v42  ;;  %v299_v59 = vmul.u32 %v295_v48, %v271_v42  ;;  %416 = vmatpush.msra.mxu0 %v399_v44  ;;  %v397_v48 = vld [vmem:[%s671_s3 + $0x28] sm:$0xff] }
  0x27   : > { %v274_v50 = vmul.u32 %v272_v45, %v270_v41  ;;  %v275_v51 = vmul.u32 %v273_v46, %v270_v41  ;;  %v276_v52 = vmul.u32 %v272_v45, %v271_v42  ;;  %v277_v56 = vmul.u32 %v273_v46, %v271_v42  ;;  %v398_v45 = vld [vmem:[%s671_s3 + $0x30] sm:$0xff] }
  0x28   : > { %v300_v60 = vshll.u32 %v297_v54, 16  ;;  %v302_v61 = vshll.u32 %v298_v55, 16  ;;  %v301_v10 = vshrl.u32 %v297_v54, 16  ;;  %v303_v17 = vshrl.u32 %v298_v55, 16  ;;  %417 = vmatpush.msra.mxu0 %v398_v45 }
  0x29   : > { %v278_v57 = vshll.u32 %v275_v51, 16  ;;  %v280_v58 = vshll.u32 %v276_v52, 16  ;;  %v279_v6 = vshrl.u32 %v275_v51, 16  ;;  %v281_v14 = vshrl.u32 %v276_v52, 16 }
  0x2a   : > { %vm304_vm6 = vc.u32 %v296_v53, %v300_v60  ;;  %v306_v5 = vadd.s32 %v300_v60, %v296_v53  ;;  %418 = vmatpush.msra.mxu0 %v397_v48  ;;  %v395_v53 = vld [vmem:[%s671_s3 + $0x18] sm:$0xff] }
  0x2b   : > { %vm282_vm5 = vc.u32 %v274_v50, %v278_v57  ;;  %v284_v63 = vadd.s32 %v278_v57, %v274_v50  ;;  %v305_v8 = vsel %vm304_vm6, 1, %v523_v0  ;;  %v396_v50 = vld [vmem:[%s671_s3 + $0x20] sm:$0xff] }
  0x2c   : > { %v283_v3 = vsel %vm282_vm5, 1, %v523_v0  ;;  %v307_v12 = vadd.s32 %v305_v8, %v299_v59  ;;  %vm308_vm8 = vc.u32 %v306_v5, %v302_v61  ;;  %v310_v20 = vadd.s32 %v306_v5, %v302_v61  ;;  %419 = vmatpush.msra.mxu0 %v396_v50 }
  0x2d   : > { %v285_v7 = vadd.s32 %v283_v3, %v277_v56  ;;  %vm286_vm7 = vc.u32 %v284_v63, %v280_v58  ;;  %v309_v16 = vsel %vm308_vm8, 1, %v523_v0 }
  0x2e   : > { %v287_v9 = vsel %vm286_vm7, 1, %v523_v0  ;;  %v311_v18 = vadd.s32 %v309_v16, %v307_v12  ;;  %420 = vmatpush.msra.mxu0 %v395_v53 }
  0x2f   : > { %v289_v15 = vadd.s32 %v287_v9, %v285_v7 }
  0x30   : > { %v312_v22 = vadd.s32 %v311_v18, %v301_v10 }
  0x31   : > { %v290_v19 = vadd.s32 %v289_v15, %v279_v6 }
  0x32   : > { %v313_v24 = vadd.s32 %v312_v22, %v303_v17  ;;  %v392_v22 = vld [vmem:[%s671_s3] sm:$0xff] }
  0x33   : > { %v291_v23 = vadd.s32 %v290_v19, %v281_v14 }
  0x34   : > { %v317_v26 = vadd.s32 1, %v313_v24 }
  0x35   : > { %vm316_vm9 = vc.u32 %v291_v23, %v310_v20  ;;  %v315_v11 = vadd.s32 %v310_v20, %v291_v23  ;;  %v394_v20 = vld [vmem:[%s671_s3 + $0x10] sm:$0xff]  ;;  %v513_v23 = vld [vmem:[%s670_s2] ss:$0 sm:$0xff] }
  0x36   : > { %v318_v27 = vsel %vm316_vm9, %v317_v26, %v313_v24  ;;  %421 = vmatpush.msra.mxu0 %v394_v20 }
  0x37   : > { %v319_v28 = vadd.s32 %v318_v27, %v314_v25 }
  0x38   : > { %422 = vmatpush.msra.mxu0 %v393_v21 }
  0x39   : > { %v320_v30 = vadd.s32 536870912, %v319_v28 }
  0x3a   : > { %423 = vmatpush.msra.mxu0 %v392_v22 }
  0x3b   : > { %v321_v31 = vshrl.u32 %v320_v30, 30 }
  0x3d   : > { %v322_v32 = vshll.u32 %v321_v31, 30  ;;  %v345_v52 = vsub.s32 4, %v321_v31 }
  0x3f   : > { %v323_v0 = vsub.s32 %v319_v28, %v322_v32  ;;  %v346_v56 = vsel %vm223_vm12, %v345_v52, %v321_v31  ;;  %v514_v28 = vld [vmem:[%s672_s4] ss:$0 sm:$0xff] }
  0x40   : > { %v348_v59 = vsel %vm222_vm13, 0, %v346_v56 }
  0x41   : > { %vm324_vm10 = vcmp.lt.s32.totalorder %v323_v0, 0  ;;  %v325_v33 = vsub.s32 0, %v323_v0  ;;  %v365_v2 = vadd.s32 3, %v348_v59 }
  0x43   : > { %v326_v34 = vsel %vm324_vm10, %v325_v33, %v323_v0  ;;  %v366_v8 = vand.u32 3, %v365_v2 }
  0x44   : > { %v327_v35 = vclz %v326_v34 }
  0x45   : > { %vm371_vm14 = vcmp.eq.s32.totalorder %v366_v8, 2  ;;  %vm368_vm15 = vcmp.eq.s32.totalorder %v366_v8, 0  ;;  %vm367_vm0 = vcmp.lt.s32.totalorder %v366_v8, 2 }
  0x46   : > { %v491_v36 = vadd.s32 4294967294, %v327_v35 }
  0x48   : > { %vm492_vm11 = vcmp.lt.s32.totalorder %v491_v36, 0 }
  0x49   : > { %v330_v37 = vsel %vm492_vm11, 0, %v491_v36 }
  0x4a   : > { %v331_v38 = vsub.s32 32, %v330_v37  ;;  %v332_v39 = vshll.u32 %v323_v0, %v330_v37  ;;  %v335_v40 = vsub.s32 4294967266, %v330_v37 }
  0x4c   : > { %v333_v29 = vshrl.u32 %v315_v11, %v331_v38  ;;  %v336_v41 = vadd.s32 127, %v335_v40 }
  0x4e   : > { %v334_v42 = vor.u32 %v333_v29, %v332_v39  ;;  %v337_v43 = vshll.u32 %v336_v41, 23 }
  0x50   : > { %v338_v46 = vor.u32 4788187, %v337_v43  ;;  %v341_v47 = vcvt.s32.f32 %v334_v42 }
  0x52   : > { %v339_v49 = vand.u32 2147483647, %v338_v46 }
  0x54   : > { %v342_v51 = vmul.f32 %v341_v47, %v339_v49 }
  0x56   : > { %v343_v54 = vxor.u32 2147483648, %v342_v51 }
  0x58   : > { %v344_v55 = vsel %vm223_vm12, %v343_v54, %v342_v51 }
  0x59   : > { %v347_v57 = vsel %vm222_vm13, %v577_v1, %v344_v55  ;;  %v512_v1 = vld [vmem:[%s669_s1] ss:$0 sm:$0xff] }
  0x5a   : > { %v349_v58 = vmul.f32 %v347_v57, %v347_v57 }
  0x5c   : > { %v350_v60 = vmul.f32 -0.001358992, %v349_v58  ;;  %v357_v61 = vmul.f32 -0.00019511016, %v349_v58 }
  0x5e   : > { %v351_v62 = vadd.f32 0.041655596, %v350_v60  ;;  %v358_v63 = vadd.f32 0.008332121, %v357_v61 }
  0x60   : > { %v352_v3 = vmul.f32 %v351_v62, %v349_v58  ;;  %v359_v5 = vmul.f32 %v358_v63, %v349_v58 }
  0x62   : > { %v353_v6 = vadd.f32 -0.4999988, %v352_v3  ;;  %v360_v7 = vadd.f32 -0.16666654, %v359_v5 }
  0x64   : > { %v354_v4 = vmul.f32 %v353_v6, %v349_v58  ;;  %v361_v9 = vmul.f32 %v360_v7, %v349_v58 }
  0x66   : > { %v355_v10 = vadd.f32 1.0, %v354_v4  ;;  %v362_v12 = vadd.f32 1.0, %v361_v9 }
  0x68   : > { %v363_v13 = vmul.f32 %v362_v12, %v347_v57  ;;  %v372_v14 = vxor.u32 2147483648, %v355_v10 }
  0x6a   : > { %v369_v15 = vxor.u32 2147483648, %v363_v13  ;;  %v373_v16 = vsel %vm371_vm14, %v372_v14, %v363_v13 }
  0x6c   : > { %v370_v17 = vsel %vm368_vm15, %v355_v10, %v369_v15 }
  0x6d   : > { %v374_v18 = vsel %vm367_vm0, %v370_v17, %v373_v16 }
  0x6e   : > { %v375_v19 = vsel %vm364_vm1, nan, %v374_v18 }
  0x6f   : > { %379 = vperm.xlu0 %511, %v375_v19  }
  0xe1   : > { %v380_v24 = vpop.permute.xlu0 %379 }
  0xe2   : > { %v385_v25 = vmul.f32 %v512_v1, %v380_v24 }
  0xe4   : > { %v390_v26 = vadd.f32 %v513_v23, %v385_v25 }
  0xe6   : > { %v391_v27 = vmax.f32 %v390_v26, 0.0 }
  0xe8   : > { %493 = vmatmul.msk.f32.vlgmr.msra.gmra.mxu0 %vm404_vm2, %v391_v27 }
 0x165   : > { %v425_v30 = vpop.f32.mrf.mxu0 }
 0x166   : > { %v426_v31 = vadd.f32 %v514_v28, %v425_v30 }
 0x168   : > { %429 = vst.msk [vmem:[%s219_s26] sm:$0xff] %vm428_vm3, %v426_v31 }
 0x169 PF: > { %s15_s18 = sadd.s32 1, %s521_s18  }
 0x16a   : > { %p12_p4 = scmp.ge.s32.totalorder %s15_s18, 5  }
 0x16c   :  { %14 = sbr.rel (!%p12_p4) target bundleno = 1 (0x1), region = 70 }

</bundles_post_ra>
